<compile_context>
chip_gen: v7x
topology: tpu7x:2x2x1
jax: 0.10.0
libtpu: 0.0.40
codegen_flags: <defaults>
</compile_context>

<pallas_src>
import functools
import math

import jax
import jax.numpy as jnp
from jax import lax
from jax.experimental import pallas as pl
from jax.experimental.pallas import tpu as pltpu


def _round_up(x, m):
    return -(-x // m) * m


def _round_down(x, m):
    return (x // m) * m


@functools.lru_cache(maxsize=1)
def _tpu_vmem_and_cores():
    """Best-effort (VMEM bytes per core, TensorCores per chip) detection."""
    vmem_cap = 64 << 20   # conservative default (v7x-sized)
    num_cores = 1
    kind = ""
    try:
        kind = jax.devices()[0].device_kind.lower()
    except Exception:
        pass
    if "v2" in kind or "v3" in kind:
        vmem_cap = 16 << 20
    elif "v4" in kind or "v5" in kind or "v6" in kind:
        vmem_cap = 128 << 20
    elif "v7" in kind or "7x" in kind:
        vmem_cap, num_cores = 64 << 20, 2
    try:
        info = pltpu.get_tpu_info()
        cap = getattr(info, "vmem_capacity_bytes", None)
        if cap:
            vmem_cap = int(cap)
        cores = (getattr(info, "num_cores", None)
                 or getattr(info, "tensorcore_count", None))
        if cores:
            num_cores = max(1, min(int(cores), 2))
    except Exception:
        pass
    return vmem_cap, num_cores


def _add_mult_vec_kernel(use_mult, use_add, cond_mode, k, d, compute_dtype,
                         *refs):
    # refs: x_ref, [cond_ref], [mult_ref], [add_ref], o_ref
    it = iter(refs)
    x_ref = next(it)
    cond_ref = next(it) if cond_mode != "none" else None
    mult_ref = next(it) if use_mult else None
    add_ref = next(it) if use_add else None
    o_ref = next(it)

    # Cast on the VMEM tile (VPU slack is huge at mem-bound); HBM stays native.
    x = x_ref[...].astype(compute_dtype)                 # (1, tile, Df)

    c = None
    if cond_mode != "none":
        c = cond_ref[...]
        if cond_mode == "row" and k > 1:
            # Per-position scalar condition with k rows folded into the lane
            # axis: expand each scalar across its D lanes via a tiny selection
            # matmul (avoids an in-kernel lane reshape; MXU is otherwise idle).
            df = k * d
            lane = lax.broadcasted_iota(jnp.int32, (k, df), 1)
            sub = lax.broadcasted_iota(jnp.int32, (k, df), 0)
            sel = ((lane >= sub * d) & (lane < (sub + 1) * d)).astype(jnp.float32)
            c = jnp.dot(c[0].astype(jnp.float32), sel,
                        preferred_element_type=jnp.float32)[None]
        c = c.astype(compute_dtype)

    if use_mult:
        x = x * mult_ref[...]                            # (1,tile,Df) * (1,Df)
        if c is not None:
            x = (1.0 + c) * x
    if use_add:
        if c is not None:
            x = x + c * add_ref[...]
        else:
            x = x + add_ref[...]
    o_ref[...] = x.astype(o_ref.dtype)


def add_mult_vec(x, mult_hook=None, add_hook=None, condition=None, *,
                 use_add=True, use_mult=True,
                 vmem_budget_bytes=None, donate_x=False):
    """Pallas implementation of AddMultVec.forward.

    x:         [..., D]
    mult_hook: [D] (required iff use_mult)
    add_hook:  [D] (required iff use_add)
    condition: None, or broadcastable to x.shape
    """
    orig_shape = tuple(x.shape)
    n = len(orig_shape)
    D = orig_shape[-1]
    lead = orig_shape[:-1]
    rows = int(math.prod(lead))
    assert rows > 0 and D > 0, "empty inputs are not supported"

    # Promoted compute/output dtype (reference semantics).
    parts = [x]
    if use_mult:
        parts.append(mult_hook)
    if use_add:
        parts.append(add_hook)
    if condition is not None:
        parts.append(condition)
    out_dtype = jnp.result_type(*parts)
    compute_dtype = out_dtype

    # ---- classify the condition; never materialize an HBM broadcast for the
    #      common adapter patterns.
    cond_mode = "none"
    cond = None
    c_last = None
    G, inner = 1, rows
    if condition is not None and (use_add or use_mult):
        cond = jnp.asarray(condition)
        if cond.ndim > n:
            raise ValueError("condition has higher rank than x")
        cshape = (1,) * (n - cond.ndim) + tuple(cond.shape)
        c_last = cshape[-1]
        if cshape[:-1] == lead and c_last in (D, 1):
            cond_mode = "rows_full" if c_last == D else "row"
        else:
            # prefix-match pattern: (x[0:p], 1, ..., 1, {D|1})
            p = n - 1
            while p > 0 and cshape[p - 1] == 1:
                p -= 1
            if all(cshape[i] == lead[i] for i in range(p)) and c_last in (1, D):
                cond_mode = "group"
                G = int(math.prod(lead[:p]))
                inner = rows // G
            else:
                # TODO(synk): suffix-broadcast conditions (e.g. (1, S, D) vs
                # (B, S, D)) still materialize a full HBM broadcast; they could
                # be expressed with an extra grid axis + index_map instead.
                cond = jnp.broadcast_to(cond, orig_shape)
                cond_mode = "rows_full"

    # ---- generalized lane folding: k = 128 // gcd(D, 128) rows into lanes.
    k = 1
    if D % 128 != 0:
        kk = 128 // math.gcd(D, 128)
        if kk > 1 and inner % kk == 0 and D * kk <= 2048:
            k = kk
    Df = D * k
    R = inner // k                       # rows per group after folding

    # ---- generation-aware sizing.
    vmem_cap, num_cores = _tpu_vmem_and_cores()
    if vmem_budget_bytes is None:
        if vmem_cap >= (96 << 20):       # v4 / v5e / v6e: 128 MiB physical VMEM
            vmem_budget_bytes = 56 << 20
        elif vmem_cap >= (48 << 20):     # v7x: 64 MiB physical VMEM per core
            vmem_budget_bytes = 40 << 20
        else:                            # small-VMEM parts (v2/v3)
            vmem_budget_bytes = max(4 << 20, (vmem_cap * 5) // 8)
    max_block_bytes = (8 << 20) if vmem_cap >= (96 << 20) else (4 << 20)
    vmem_limit = min(vmem_cap - vmem_cap // 8, vmem_budget_bytes + (8 << 20))

    x_item = jnp.dtype(x.dtype).itemsize
    out_item = jnp.dtype(out_dtype).itemsize
    items = [x_item, out_item]
    db_per_row = Df * (x_item + out_item)      # double-buffered streams
    temp_per_row = Df * out_item               # in-kernel compute temporary
    if cond_mode == "rows_full":
        ci = jnp.dtype(cond.dtype).itemsize
        db_per_row += Df * ci
        items.append(ci)
    elif cond_mode == "row":
        ci = jnp.dtype(cond.dtype).itemsize
        db_per_row += 128 * ci                 # (tile, k) block lane-pads to 128
        items.append(ci)
        if k > 1:
            temp_per_row += Df * 4             # f32 lane-expanded condition
    sublane_pack = 8 * max(1, 4 // min(items))

    tile = vmem_budget_bytes // (2 * db_per_row + temp_per_row)
    tile = max(sublane_pack, _round_down(tile, sublane_pack))
    big_row = Df * max(x_item, out_item)
    tile = min(tile, max(sublane_pack,
                         _round_down(max_block_bytes // big_row, sublane_pack)))
    tile = min(tile, _round_up(R, sublane_pack))

    # >= 2 grid steps per TensorCore (v7x megacore) when there is enough work.
    min_steps = 2 * num_cores
    steps = G * pl.cdiv(R, tile)
    if steps < min_steps:
        want_j = -(-min_steps // G)
        cand = max(sublane_pack, _round_up(-(-R // want_j), sublane_pack))
        if cand < tile and cand * big_row >= (256 << 10):
            tile = cand
    grid = (G, pl.cdiv(R, tile))

    # ---- specs & inputs (x / full condition stay in native dtype).
    row_spec = pl.BlockSpec((1, tile, Df), lambda g, j: (g, j, 0))
    vec_spec = pl.BlockSpec((1, Df), lambda g, j: (0, 0))

    x3 = x.reshape(G, R, Df)
    in_arrays = [x3]
    in_specs = [row_spec]

    if cond_mode == "rows_full":
        in_arrays.append(cond.reshape(G, R, Df))
        in_specs.append(row_spec)
    elif cond_mode == "row":
        in_arrays.append(cond.reshape(G, R, k))
        in_specs.append(pl.BlockSpec((1, tile, k), lambda g, j: (g, j, 0)))
    elif cond_mode == "group":
        cg = cond.astype(compute_dtype).reshape(G, c_last)
        if c_last == D and k > 1:
            cg = jnp.tile(cg, (1, k))
        dcf = cg.shape[-1]
        in_arrays.append(cg.reshape(G, 1, dcf))
        in_specs.append(pl.BlockSpec((1, 1, dcf), lambda g, j: (g, 0, 0)))

    if use_mult:
        mh = jnp.asarray(mult_hook, dtype=compute_dtype).reshape(1, D)
        in_arrays.append(jnp.tile(mh, (1, k)) if k > 1 else mh)
        in_specs.append(vec_spec)
    if use_add:
        ah = jnp.asarray(add_hook, dtype=compute_dtype).reshape(1, D)
        in_arrays.append(jnp.tile(ah, (1, k)) if k > 1 else ah)
        in_specs.append(vec_spec)

    kernel = functools.partial(_add_mult_vec_kernel, use_mult, use_add,
                               cond_mode, k, D, compute_dtype)

    # Aliasing is only meaningful when no dtype conversion happens.
    io_alias = {0: 0} if (donate_x and
                          jnp.dtype(x.dtype) == jnp.dtype(out_dtype)) else {}

    out = pl.pallas_call(
        kernel,
        out_shape=jax.ShapeDtypeStruct((G, R, Df), out_dtype),
        grid=grid,
        in_specs=in_specs,
        out_specs=row_spec,
        input_output_aliases=io_alias,
        compiler_params=pltpu.CompilerParams(
            dimension_semantics=("parallel", "parallel"),
            vmem_limit_bytes=int(vmem_limit),
        ),
    )(*in_arrays)
    return out.reshape(orig_shape)


def add_mult_vec_ref(x, mult_hook=None, add_hook=None, condition=None,
                     *, use_add=True, use_mult=True):
    if use_mult:
        x = x * mult_hook
        if condition is not None:
            x = (1.0 + condition) * x
    if use_add:
        if condition is not None:
            x = x + condition * add_hook
        else:
            x = x + add_hook
    return x


if __name__ == "__main__":
    B, S, D = 2, 8, 32  # batch, seq, hidden (input_dim)
    key = jax.random.PRNGKey(0)
    kx, kc, km, ka, kr, kf, kg, kb = jax.random.split(key, 8)

    x = jax.random.normal(kx, (B, S, D), dtype=jnp.float32)
    cond_full = jax.random.normal(kc, (B, S, D), dtype=jnp.float32)
    cond_row = jax.random.normal(kr, (B, S, 1), dtype=jnp.float32)
    cond_feat = jax.random.normal(kf, (D,), dtype=jnp.float32)
    cond_group = jax.random.normal(kg, (B, 1, D), dtype=jnp.float32)

    # Parameters initialized as in the module, perturbed so the test is non-trivial.
    add_hook = 0.1 * jax.random.normal(ka, (D,), dtype=jnp.float32)
    mult_hook = 1.0 + 0.1 * jax.random.normal(km, (D,), dtype=jnp.float32)

    def check(out, ref, tol=1e-5):
        out = jax.block_until_ready(out)
        assert out.shape == ref.shape, (out.shape, ref.shape)
        assert out.dtype == ref.dtype, (out.dtype, ref.dtype)
        assert jnp.allclose(out, ref, atol=tol, rtol=tol), \
            float(jnp.max(jnp.abs(out.astype(jnp.float32) - ref.astype(jnp.float32))))

    # 1) condition=None (lane-folded: D=32 -> 128 lanes)
    check(add_mult_vec(x, mult_hook, add_hook, None),
          add_mult_vec_ref(x, mult_hook, add_hook, None))
    # 2) full-rank condition (streamed in native dtype, cast in VMEM)
    check(add_mult_vec(x, mult_hook, add_hook, cond_full),
          add_mult_vec_ref(x, mult_hook, add_hook, cond_full))
    # 3) per-position condition [..., 1] (folded; lane-expanded in-kernel)
    check(add_mult_vec(x, mult_hook, add_hook, cond_row),
          add_mult_vec_ref(x, mult_hook, add_hook, cond_row))
    # 4) per-feature condition [D] (resident (1, Df) block)
    check(add_mult_vec(x, mult_hook, add_hook, cond_feat),
          add_mult_vec_ref(x, mult_hook, add_hook, cond_feat))
    # 5) per-example condition [B, 1, D] (group path, no HBM broadcast)
    check(add_mult_vec(x, mult_hook, add_hook, cond_group),
          add_mult_vec_ref(x, mult_hook, add_hook, cond_group))
    # 6) ragged row count (no fold, partial tiles) + add-only / mult-only
    x2 = jax.random.normal(kb, (3, 5, D), dtype=jnp.float32)
    c2 = jax.random.normal(kc, (3, 5, D), dtype=jnp.float32)
    check(add_mult_vec(x2, mult_hook, add_hook, c2),
          add_mult_vec_ref(x2, mult_hook, add_hook, c2))
    check(add_mult_vec(x2, None, add_hook, c2, use_mult=False),
          add_mult_vec_ref(x2, None, add_hook, c2, use_mult=False))
    check(add_mult_vec(x2, mult_hook, None, c2, use_add=False),
          add_mult_vec_ref(x2, mult_hook, None, c2, use_add=False))
    # 7) mixed dtypes: bf16 activations, f32 hooks -> cast on the VMEM tile
    xb = x.astype(jnp.bfloat16)
    check(add_mult_vec(xb, mult_hook, add_hook, cond_full),
          add_mult_vec_ref(xb, mult_hook, add_hook, cond_full))

    print("KERNEL_OK")
</pallas_src>

<mosaic_0001>
module attributes {stable_mosaic.version = 11 : i64} {
  func.func @_add_mult_vec_kernel(%arg0: i32, %arg1: i32, %arg2: memref<1x8x128xf32, #tpu.memory_space<vmem>>, %arg3: memref<1x128xf32, #tpu.memory_space<vmem>>, %arg4: memref<1x128xf32, #tpu.memory_space<vmem>>, %arg5: memref<1x8x128xf32, #tpu.memory_space<vmem>>) attributes {dimension_semantics = [#tpu.dimension_semantics<parallel>, #tpu.dimension_semantics<parallel>], iteration_bounds = array<i64: 1, 1>, scalar_prefetch = 0 : i64, scratch_operands = 0 : i64, tpu.core_type = #tpu.core_type<tc>, window_params = [{transform_indices = @transform_0, window_bounds = array<i64: 1, 8, 128>}, {pipeline_mode = #tpu.pipeline_mode<synchronous>, transform_indices = @transform_1, window_bounds = array<i64: 1, 128>}, {pipeline_mode = #tpu.pipeline_mode<synchronous>, transform_indices = @transform_2, window_bounds = array<i64: 1, 128>}, {transform_indices = @transform_3, window_bounds = array<i64: 1, 8, 128>}]} {
    %c0 = arith.constant 0 : index
    %c0_0 = arith.constant 0 : index
    %c0_1 = arith.constant 0 : index
    %0 = vector.load %arg2[%c0, %c0_0, %c0_1] : memref<1x8x128xf32, #tpu.memory_space<vmem>>, vector<1x8x128xf32>
    %c0_2 = arith.constant 0 : index
    %c0_3 = arith.constant 0 : index
    %1 = vector.load %arg3[%c0_2, %c0_3] : memref<1x128xf32, #tpu.memory_space<vmem>>, vector<1x128xf32>
    %2 = vector.shape_cast %1 : vector<1x128xf32> to vector<1x1x128xf32>
    %3 = vector.broadcast %2 : vector<1x1x128xf32> to vector<1x8x128xf32>
    %4 = arith.mulf %0, %3 : vector<1x8x128xf32>
    %c0_4 = arith.constant 0 : index
    %c0_5 = arith.constant 0 : index
    %5 = vector.load %arg4[%c0_4, %c0_5] : memref<1x128xf32, #tpu.memory_space<vmem>>, vector<1x128xf32>
    %6 = vector.shape_cast %5 : vector<1x128xf32> to vector<1x1x128xf32>
    %7 = vector.broadcast %6 : vector<1x1x128xf32> to vector<1x8x128xf32>
    %8 = arith.addf %4, %7 : vector<1x8x128xf32>
    %c0_6 = arith.constant 0 : index
    %c0_7 = arith.constant 0 : index
    %c0_8 = arith.constant 0 : index
    %9 = vector.load %arg5[%c0_6, %c0_7, %c0_8] : memref<1x8x128xf32, #tpu.memory_space<vmem>>, vector<1x8x128xf32>
    tpu.vector_store %arg5[%c0_6, %c0_7, %c0_8], %8 {strides = array<i32>} : memref<1x8x128xf32, #tpu.memory_space<vmem>>, vector<1x8x128xf32>,
    return
  }
  func.func @transform_0(%arg0: i32, %arg1: i32) -> (i32, i32, i32) {
    %c0_i32 = arith.constant 0 : i32
    %c0_i32_0 = arith.constant 0 : i32
    return %arg0, %arg1, %c0_i32 : i32, i32, i32
  }
  func.func @transform_1(%arg0: i32, %arg1: i32) -> (i32, i32) {
    %c0_i32 = arith.constant 0 : i32
    %c0_i32_0 = arith.constant 0 : i32
    %c0_i32_1 = arith.constant 0 : i32
    return %c0_i32, %c0_i32_0 : i32, i32
  }
  func.func @transform_2(%arg0: i32, %arg1: i32) -> (i32, i32) {
    %c0_i32 = arith.constant 0 : i32
    %c0_i32_0 = arith.constant 0 : i32
    %c0_i32_1 = arith.constant 0 : i32
    return %c0_i32, %c0_i32_0 : i32, i32
  }
  func.func @transform_3(%arg0: i32, %arg1: i32) -> (i32, i32, i32) {
    %c0_i32 = arith.constant 0 : i32
    %c0_i32_0 = arith.constant 0 : i32
    return %arg0, %arg1, %c0_i32 : i32, i32, i32
  }
}

</mosaic_0001>

<bundles_post_ra>
// kernel: tpu_custom_call.1
= control target key start
LH: loop header
LB: loop body
LE: loop exit
PB: predicated region body
PF: predicated region fallthrough
CT: control target
= control target key end

     0   :  { %8 = vsyncpa [#allocation3], 0  ;;  %s178_s0 = inlined_call_operand.hbm [shape: f32[1,4,128], index: 0, kind: input, shape index: {}]   ;;  %s179_s1 = inlined_call_operand.vmem [shape: f32[1,128], index: 1, kind: input, shape index: {}]   ;;  %s180_s2 = inlined_call_operand.vmem [shape: f32[1,128], index: 2, kind: input, shape index: {}]   ;;  %s181_s3 = inlined_call_operand.hbm [shape: f32[1,4,128], index: 3, kind: output, shape index: {}]  }
   0x1   :  { %9 = vsyncpa [#allocation4], 0 }
   0x2   :  { %14 = vsyncadd [#allocation3], 64  ;;  %s118_s12 = smov [#allocation2]   ;;  %s70_s16 = scalar_lea.hbm %s178_s0, 64 }
   0x3   :  { %s15_s13 = sshll.u32 %s118_s12, 4  ;;  %p71_p0 = scmp.ne.s32.totalorder %s178_s0, %s70_s16  ;;  %s16_s13 = int_to_ptr.vmem [resolvable:$true] %s15_s13 }
   0x4   :  { %p74_p1 = scmp.lt.u32.totalorder %s70_s16, %s178_s0 }
   0x6   :  { %p76_p2 = pnand %p74_p1, %p71_p0 }
   0x8   :  { %79 = shalt.err (!%p76_p2)
}
   0x9   :  { %s80_s21 = scalar_lea.vmem %s16_s13, 64  ;;  %s84_s22 = scalar_lea.vmem %s16_s13, 128 }
   0xa   :  { %p81_p3 = scmp.ne.s32.totalorder %s16_s13, %s80_s21  ;;  %p85_p4 = scmp.lt.s32.totalorder %s16_s13, %s16_s13 }
   0xb   :  { %p86_p5 = scmp.lt.s32.totalorder %s84_s22, %s80_s21 }
   0xd   :  { %p87_p6 = por %p86_p5, %p85_p4 }
   0xf   :  { %p88_p7 = pnand %p87_p6, %p81_p3 }
  0x11   :  { %91 = shalt.err (!%p88_p7)
}
  0x12   :  { %s119_s23 = smov 64   ;;  %s120_s24 = smov 4  }
  0x13   :  { %21 = dma.hbm_to_vmem [thread:$0]  %s178_s0, 64, %s16_s13, [#allocation3], %s119_s23, %s119_s23, %s120_s24  }
  0x14   :  { %114 = dma.done.wait [#allocation3], 128  }
  0x15   :  { %115 = vsyncadd [#allocation3], 4294967168  ;;  %v29_v0 = vld [vmem:[#allocation2] sm:$0xff] }
  0x16   :  { %v64_v1 = vld [vmem:[%s179_s1] ss:$0 sm:$0xff] }
  0x17   :  { %v65_v2 = vld [vmem:[%s180_s2] ss:$0 sm:$0xff]  ;;  %v37_v3 = vmul.f32 %v64_v1, %v29_v0 }
  0x19   :  { %v45_v4 = vadd.f32 %v65_v2, %v37_v3 }
  0x1b   :  { %46 = vst [vmem:[#allocation5] sm:$0xff] %v45_v4 }
  0x1c   :  { %51 = vsyncadd [#allocation4], 64  ;;  %s121_s4 = smov [#allocation5]  }
  0x1d   :  { %s52_s5 = sshll.u32 %s121_s4, 4  ;;  %s53_s5 = int_to_ptr.vmem [resolvable:$true] %s52_s5 }
  0x1e   :  { %s92_s6 = scalar_lea.vmem %s53_s5, 64  ;;  %s96_s0 = scalar_lea.vmem %s53_s5, 128 }
  0x1f   :  { %p93_p8 = scmp.ne.s32.totalorder %s53_s5, %s92_s6  ;;  %p97_p9 = scmp.lt.s32.totalorder %s53_s5, %s53_s5 }
  0x20   :  { %p98_p10 = scmp.lt.s32.totalorder %s96_s0, %s92_s6 }
  0x22   :  { %p99_p11 = por %p98_p10, %p97_p9 }
  0x24   :  { %p100_p12 = pnand %p99_p11, %p93_p8 }
  0x26   :  { %103 = shalt.err (!%p100_p12)
}
  0x27   :  { %s104_s8 = scalar_lea.hbm %s181_s3, 64 }
  0x28   :  { %p105_p13 = scmp.ne.s32.totalorder %s181_s3, %s104_s8  ;;  %p108_p0 = scmp.lt.u32.totalorder %s104_s8, %s181_s3 }
  0x2a   :  { %p110_p1 = pnand %p108_p0, %p105_p13 }
  0x2c   :  { %113 = shalt.err (!%p110_p1)
}
  0x2d   :  { %58 = dma.vmem_to_hbm [thread:$0]  %s53_s5, 64, %s181_s3, [#allocation4], %s119_s23, %s119_s23, %s120_s24  }
  0x2e   :  { %116 = dma.done.wait [#allocation4], 128  }
  0x2f   :  { %117 = vsyncadd [#allocation4], 4294967168 }
  0x30   :  { %62 = vsyncpa [#allocation3], 1 }
  0x31   :  { %63 = vsyncpa [#allocation4], 1 }

</bundles_post_ra>
